<compile_context>
chip_gen: v6e
topology: v6e:2x2x1
jax: 0.10.0
libtpu: 0.0.40
codegen_flags: <defaults>
</compile_context>

<pallas_src>
import functools

import jax
import jax.numpy as jnp
from jax import lax
from jax.experimental import pallas as pl
from jax.experimental.pallas import tpu as pltpu


def residual_block_kernel(x_ref, w_ref, b_ref, o_ref, *, pad, chunk, use_mxu):
    # x_ref: (Bn, C_in, L)       input rows, native dtype (no pre-padding)
    # w_ref: (C_out, K*C_in)     tap-fused conv weight, column = k*C_in + ci
    # b_ref: (C_out, 1)          conv bias, f32
    # o_ref: (Bn, C_out, L)      output rows (length on the lane axis)
    Bn, C_in, L = x_ref.shape
    C_out = o_ref.shape[1]
    K = w_ref.shape[1] // C_in

    # Hoisted parameter loads (JAX does not CSE these inside the loops).
    w_all = w_ref[...]
    bias = b_ref[...].astype(jnp.float32)                  # (C_out, 1)
    w_f32 = None if use_mxu else w_all.astype(jnp.float32)

    def tap_window(b, c0, width, d):
        # x[b, :, c0+d : c0+d+width] with out-of-range columns == 0 (conv halo).
        # All offsets are static, so only the first/last chunk of edge taps
        # pays for a small zero-concat; interior taps are plain ref slices.
        lo, hi = c0 + d, c0 + d + width
        parts = []
        if lo < 0:
            parts.append(jnp.zeros((C_in, -lo), x_ref.dtype))
        parts.append(x_ref[b, :, max(lo, 0):min(hi, L)])
        if hi > L:
            parts.append(jnp.zeros((C_in, hi - L), x_ref.dtype))
        return parts[0] if len(parts) == 1 else jnp.concatenate(parts, axis=1)

    for b in range(Bn):                       # static; Bn is tiny
        for c0 in range(0, L, chunk):         # static chunk loop bounds temps
            width = min(chunk, L - c0)
            if use_mxu:
                # One fused-tap contraction per chunk: stack the K shifted
                # windows along sublanes and hit the MXU once (K*C_in deep).
                win = jnp.concatenate(
                    [tap_window(b, c0, width, k - pad) for k in range(K)], axis=0)
                acc = jnp.dot(w_all, win, preferred_element_type=jnp.float32)
            else:
                # Tiny channel counts: the MXU would be ~97% idle, so run the
                # conv as K*C_in broadcast FMAs on the VPU (length on lanes).
                acc = None
                for k in range(K):
                    xs = tap_window(b, c0, width, k - pad).astype(jnp.float32)
                    for ci in range(C_in):
                        col = k * C_in + ci
                        term = w_f32[:, col:col + 1] * xs[ci:ci + 1, :]
                        acc = term if acc is None else acc + term
            acc = jnp.maximum(acc + bias, 0.0)                       # bias + ReLU
            res = x_ref[b, :, c0:c0 + width].astype(jnp.float32)     # residual
            o_ref[b, :, c0:c0 + width] = (acc + res).astype(o_ref.dtype)


def _pick_bn(N, C_in):
    """Batch rows per block: pack several rows for tiny channel counts (bigger
    DMA bursts, fewer grid steps) while keeping >= 2 batch blocks for megacore."""
    target = 1 if C_in >= 8 else max(1, 8 // C_in)
    if N >= 2:
        target = min(target, N // 2)
    target = max(1, min(target, N))
    bn = 1
    for d in range(1, target + 1):
        if N % d == 0:
            bn = d
    return bn


def _pick_chunk(L, Bn, C_in, C_out, K, x_isz, o_isz):
    """Length-chunk size + scoped-VMEM limit, accounting for the double-buffered
    in/out row blocks AND the in-kernel f32 accumulator / stacked-tap-window /
    ReLU-residual temporaries.  Budget derives from the device's VMEM capacity
    (v7x: 64 MiB, v5e/v6e: 128 MiB)."""
    try:
        vmem_cap = int(pltpu.get_tpu_info().vmem_capacity_bytes)
    except Exception:
        vmem_cap = 64 << 20                  # conservative (v7x-sized) fallback
    budget = (vmem_cap * 3) // 5             # headroom for compiler scratch

    fixed = (2 * Bn * C_in * L * x_isz       # double-buffered input row blocks
             + 2 * Bn * C_out * L * o_isz    # double-buffered output row blocks
             + (2 << 20))                    # weights / bias / misc slack
    # Per-chunk-column temporaries: f32 acc + ReLU/residual temps + stacked window.
    per_col = 3 * C_out * 4 + K * C_in * max(x_isz, 4)

    avail = max(budget - fixed, 0)
    cap = avail // max(per_col, 1)
    chunk = min(L, 2048, max(128, (cap // 128) * 128))
    # TODO(synk): for sequences whose full row blocks exceed VMEM, add a
    # grid-level length tiling with in-kernel halo staging.
    est = fixed + chunk * per_col
    vmem_limit = int(min(max(est, 32 << 20), (vmem_cap * 3) // 4))
    return chunk, vmem_limit


def residual_block(x_ncl, weight, bias, padding, *, out_dtype=None, chunk_l=None):
    """y = relu(conv1d(x, weight, bias, padding)) + x, NCL layout end-to-end.

    x_ncl: (N, C_in, L) in its native dtype (no wrapper pad / cast HBM passes);
    weight: (C_out, C_in, K); bias: (C_out,).  `out_dtype` lets bf16 callers
    keep bf16 end-to-end (default: x.dtype, matching the torch module)."""
    N, C_in, L = x_ncl.shape
    C_out, C_in_w, K = weight.shape
    assert C_in_w == C_in
    assert C_in == C_out, "residual add requires in_channels == out_channels"
    assert L + 2 * padding - K + 1 == L, \
        "residual add requires 'same' length (padding == (K-1)//2)"

    x_dt = x_ncl.dtype
    o_dt = jnp.dtype(out_dtype) if out_dtype is not None else jnp.dtype(x_dt)

    # Only the (tiny) parameters are reshaped/cast in the wrapper; activations
    # go straight to the kernel in their native dtype and layout.
    w_fused = jnp.transpose(weight, (0, 2, 1)).reshape(C_out, K * C_in).astype(x_dt)
    b2d = bias.astype(jnp.float32).reshape(C_out, 1)

    Bn = _pick_bn(N, C_in)
    num_nb = N // Bn
    x_isz = jnp.dtype(x_dt).itemsize
    o_isz = o_dt.itemsize
    chunk, vmem_limit = _pick_chunk(L, Bn, C_in, C_out, K, x_isz, o_isz)
    if chunk_l is not None:
        assert 1 <= chunk_l <= L
        chunk = int(chunk_l)

    use_mxu = min(C_in, C_out) >= 16
    kernel = functools.partial(residual_block_kernel,
                               pad=padding, chunk=chunk, use_mxu=use_mxu)

    return pl.pallas_call(
        kernel,
        out_shape=jax.ShapeDtypeStruct((N, C_out, L), o_dt),
        grid_spec=pltpu.PrefetchScalarGridSpec(
            num_scalar_prefetch=0,
            grid=(num_nb,),
            in_specs=[
                pl.BlockSpec((Bn, C_in, L), lambda nb: (nb, 0, 0)),
                pl.BlockSpec((C_out, K * C_in), lambda nb: (0, 0)),
                pl.BlockSpec((C_out, 1), lambda nb: (0, 0)),
            ],
            out_specs=pl.BlockSpec((Bn, C_out, L), lambda nb: (nb, 0, 0)),
        ),
        compiler_params=pltpu.CompilerParams(
            dimension_semantics=("parallel",),
            vmem_limit_bytes=vmem_limit),
    )(x_ncl, w_fused, b2d)


def _reference(x_ncl, weight, bias, padding):
    # Pure-JAX reference matching torch.nn.Conv1d -> ReLU -> +residual.
    y = lax.conv_general_dilated(
        x_ncl, weight, window_strides=(1,), padding=[(padding, padding)],
        dimension_numbers=("NCH", "OIH", "NCH"),
        precision=lax.Precision.HIGHEST)
    y = y + bias.reshape(1, -1, 1)
    y = jnp.maximum(y, 0.0)
    return y + x_ncl


if __name__ == "__main__":
    key = jax.random.PRNGKey(0)
    kx, kw, kb = jax.random.split(key, 3)
    K, PAD = 3, 1   # 'same' conv so the residual add is well defined

    # 1) The module's small shapes: VPU small-channel path, f32, batch-parallel grid.
    N, C, L = 2, 4, 16
    x = jax.random.normal(kx, (N, C, L), dtype=jnp.float32)
    w = jax.random.normal(kw, (C, C, K), dtype=jnp.float32) * 0.1
    b = jax.random.normal(kb, (C,), dtype=jnp.float32) * 0.1
    out = jax.block_until_ready(residual_block(x, w, b, PAD))
    assert out.shape == (N, C, L) and out.dtype == x.dtype
    assert jnp.allclose(out, _reference(x, w, b, PAD), atol=1e-5, rtol=1e-5)

    # 2) Moderate channels, f32: fused-tap MXU contraction path, with an explicit
    #    128-column chunk so the multi-chunk static loop is exercised.
    N2, C2, L2 = 2, 32, 256
    x2 = jax.random.normal(kx, (N2, C2, L2), dtype=jnp.float32)
    w2 = jax.random.normal(kw, (C2, C2, K), dtype=jnp.float32) * 0.1
    b2 = jax.random.normal(kb, (C2,), dtype=jnp.float32) * 0.1
    out2 = jax.block_until_ready(residual_block(x2, w2, b2, PAD, chunk_l=128))
    assert jnp.allclose(out2, _reference(x2, w2, b2, PAD), atol=3e-2, rtol=3e-2)

    # 3) bf16 activations end-to-end (native bf16 in, bf16 out; f32 accumulation).
    x3 = x2.astype(jnp.bfloat16)
    w3 = w2.astype(jnp.bfloat16)
    out3 = jax.block_until_ready(residual_block(x3, w3, b2, PAD))
    assert out3.dtype == jnp.bfloat16
    ref3 = _reference(x3.astype(jnp.float32), w3.astype(jnp.float32), b2, PAD)
    assert jnp.allclose(out3.astype(jnp.float32), ref3, atol=3e-2, rtol=3e-2)

    print("KERNEL_OK")
</pallas_src>

<mosaic_0001>
module attributes {stable_mosaic.version = 11 : i64} {
  func.func @residual_block_kernel(%arg0: i32, %arg1: memref<1x4x16xf32, #tpu.memory_space<vmem>>, %arg2: memref<4x12xf32, #tpu.memory_space<vmem>>, %arg3: memref<4x1xf32, #tpu.memory_space<vmem>>, %arg4: memref<1x4x16xf32, #tpu.memory_space<vmem>>) attributes {dimension_semantics = [#tpu.dimension_semantics<parallel>], iteration_bounds = array<i64: 2>, scalar_prefetch = 0 : i64, scratch_operands = 0 : i64, tpu.core_type = #tpu.core_type<tc>, window_params = [{transform_indices = @transform_0, window_bounds = array<i64: 1, 4, 16>}, {pipeline_mode = #tpu.pipeline_mode<synchronous>, transform_indices = @transform_1, window_bounds = array<i64: 4, 12>}, {pipeline_mode = #tpu.pipeline_mode<synchronous>, transform_indices = @transform_2, window_bounds = array<i64: 4, 1>}, {transform_indices = @transform_3, window_bounds = array<i64: 1, 4, 16>}]} {
    %c0 = arith.constant 0 : index
    %c0_0 = arith.constant 0 : index
    %0 = vector.load %arg2[%c0, %c0_0] : memref<4x12xf32, #tpu.memory_space<vmem>>, vector<4x12xf32>
    %c0_1 = arith.constant 0 : index
    %c0_2 = arith.constant 0 : index
    %1 = vector.load %arg3[%c0_1, %c0_2] : memref<4x1xf32, #tpu.memory_space<vmem>>, vector<4x1xf32>
    %cst = arith.constant 0.000000e+00 : f32
    %2 = vector.broadcast %cst : f32 to vector<4x1xf32>
    %c0_3 = arith.constant 0 : index
    %c0_4 = arith.constant 0 : index
    %c0_5 = arith.constant 0 : index
    %3 = vector.load %arg1[%c0_3, %c0_4, %c0_5] : memref<1x4x16xf32, #tpu.memory_space<vmem>>, vector<1x4x15xf32>
    %4 = vector.shape_cast %3 : vector<1x4x15xf32> to vector<4x15xf32>
    %5 = tpu.concatenate %2, %4 in 1 : vector<4x1xf32>, vector<4x15xf32> -> vector<4x16xf32>
    %6 = vector.extract_strided_slice %0 {offsets = [0, 0], sizes = [4, 1], strides = [1, 1]} : vector<4x12xf32> to vector<4x1xf32>
    %7 = vector.extract_strided_slice %5 {offsets = [0, 0], sizes = [1, 16], strides = [1, 1]} : vector<4x16xf32> to vector<1x16xf32>
    %8 = vector.broadcast %6 : vector<4x1xf32> to vector<4x16xf32>
    %9 = vector.broadcast %7 : vector<1x16xf32> to vector<4x16xf32>
    %10 = arith.mulf %8, %9 : vector<4x16xf32>
    %11 = vector.extract_strided_slice %0 {offsets = [0, 1], sizes = [4, 1], strides = [1, 1]} : vector<4x12xf32> to vector<4x1xf32>
    %12 = vector.extract_strided_slice %5 {offsets = [1, 0], sizes = [1, 16], strides = [1, 1]} : vector<4x16xf32> to vector<1x16xf32>
    %13 = vector.broadcast %11 : vector<4x1xf32> to vector<4x16xf32>
    %14 = vector.broadcast %12 : vector<1x16xf32> to vector<4x16xf32>
    %15 = arith.mulf %13, %14 : vector<4x16xf32>
    %16 = arith.addf %10, %15 : vector<4x16xf32>
    %17 = vector.extract_strided_slice %0 {offsets = [0, 2], sizes = [4, 1], strides = [1, 1]} : vector<4x12xf32> to vector<4x1xf32>
    %18 = vector.extract_strided_slice %5 {offsets = [2, 0], sizes = [1, 16], strides = [1, 1]} : vector<4x16xf32> to vector<1x16xf32>
    %19 = vector.broadcast %17 : vector<4x1xf32> to vector<4x16xf32>
    %20 = vector.broadcast %18 : vector<1x16xf32> to vector<4x16xf32>
    %21 = arith.mulf %19, %20 : vector<4x16xf32>
    %22 = arith.addf %16, %21 : vector<4x16xf32>
    %23 = vector.extract_strided_slice %0 {offsets = [0, 3], sizes = [4, 1], strides = [1, 1]} : vector<4x12xf32> to vector<4x1xf32>
    %24 = vector.extract_strided_slice %5 {offsets = [3, 0], sizes = [1, 16], strides = [1, 1]} : vector<4x16xf32> to vector<1x16xf32>
    %25 = vector.broadcast %23 : vector<4x1xf32> to vector<4x16xf32>
    %26 = vector.broadcast %24 : vector<1x16xf32> to vector<4x16xf32>
    %27 = arith.mulf %25, %26 : vector<4x16xf32>
    %28 = arith.addf %22, %27 : vector<4x16xf32>
    %c0_6 = arith.constant 0 : index
    %c0_7 = arith.constant 0 : index
    %c0_8 = arith.constant 0 : index
    %29 = vector.load %arg1[%c0_6, %c0_7, %c0_8] : memref<1x4x16xf32, #tpu.memory_space<vmem>>, vector<1x4x16xf32>
    %30 = vector.shape_cast %29 : vector<1x4x16xf32> to vector<4x16xf32>
    %31 = vector.extract_strided_slice %0 {offsets = [0, 4], sizes = [4, 1], strides = [1, 1]} : vector<4x12xf32> to vector<4x1xf32>
    %32 = vector.extract_strided_slice %30 {offsets = [0, 0], sizes = [1, 16], strides = [1, 1]} : vector<4x16xf32> to vector<1x16xf32>
    %33 = vector.broadcast %31 : vector<4x1xf32> to vector<4x16xf32>
    %34 = vector.broadcast %32 : vector<1x16xf32> to vector<4x16xf32>
    %35 = arith.mulf %33, %34 : vector<4x16xf32>
    %36 = arith.addf %28, %35 : vector<4x16xf32>
    %37 = vector.extract_strided_slice %0 {offsets = [0, 5], sizes = [4, 1], strides = [1, 1]} : vector<4x12xf32> to vector<4x1xf32>
    %38 = vector.extract_strided_slice %30 {offsets = [1, 0], sizes = [1, 16], strides = [1, 1]} : vector<4x16xf32> to vector<1x16xf32>
    %39 = vector.broadcast %37 : vector<4x1xf32> to vector<4x16xf32>
    %40 = vector.broadcast %38 : vector<1x16xf32> to vector<4x16xf32>
    %41 = arith.mulf %39, %40 : vector<4x16xf32>
    %42 = arith.addf %36, %41 : vector<4x16xf32>
    %43 = vector.extract_strided_slice %0 {offsets = [0, 6], sizes = [4, 1], strides = [1, 1]} : vector<4x12xf32> to vector<4x1xf32>
    %44 = vector.extract_strided_slice %30 {offsets = [2, 0], sizes = [1, 16], strides = [1, 1]} : vector<4x16xf32> to vector<1x16xf32>
    %45 = vector.broadcast %43 : vector<4x1xf32> to vector<4x16xf32>
    %46 = vector.broadcast %44 : vector<1x16xf32> to vector<4x16xf32>
    %47 = arith.mulf %45, %46 : vector<4x16xf32>
    %48 = arith.addf %42, %47 : vector<4x16xf32>
    %49 = vector.extract_strided_slice %0 {offsets = [0, 7], sizes = [4, 1], strides = [1, 1]} : vector<4x12xf32> to vector<4x1xf32>
    %50 = vector.extract_strided_slice %30 {offsets = [3, 0], sizes = [1, 16], strides = [1, 1]} : vector<4x16xf32> to vector<1x16xf32>
    %51 = vector.broadcast %49 : vector<4x1xf32> to vector<4x16xf32>
    %52 = vector.broadcast %50 : vector<1x16xf32> to vector<4x16xf32>
    %53 = arith.mulf %51, %52 : vector<4x16xf32>
    %54 = arith.addf %48, %53 : vector<4x16xf32>
    %c0_9 = arith.constant 0 : index
    %c0_10 = arith.constant 0 : index
    %c1 = arith.constant 1 : index
    %55 = vector.load %arg1[%c0_9, %c0_10, %c1] : memref<1x4x16xf32, #tpu.memory_space<vmem>>, vector<1x4x15xf32>
    %56 = vector.shape_cast %55 : vector<1x4x15xf32> to vector<4x15xf32>
    %cst_11 = arith.constant 0.000000e+00 : f32
    %57 = vector.broadcast %cst_11 : f32 to vector<4x1xf32>
    %58 = tpu.concatenate %56, %57 in 1 : vector<4x15xf32>, vector<4x1xf32> -> vector<4x16xf32>
    %59 = vector.extract_strided_slice %0 {offsets = [0, 8], sizes = [4, 1], strides = [1, 1]} : vector<4x12xf32> to vector<4x1xf32>
    %60 = vector.extract_strided_slice %58 {offsets = [0, 0], sizes = [1, 16], strides = [1, 1]} : vector<4x16xf32> to vector<1x16xf32>
    %61 = vector.broadcast %59 : vector<4x1xf32> to vector<4x16xf32>
    %62 = vector.broadcast %60 : vector<1x16xf32> to vector<4x16xf32>
    %63 = arith.mulf %61, %62 : vector<4x16xf32>
    %64 = arith.addf %54, %63 : vector<4x16xf32>
    %65 = vector.extract_strided_slice %0 {offsets = [0, 9], sizes = [4, 1], strides = [1, 1]} : vector<4x12xf32> to vector<4x1xf32>
    %66 = vector.extract_strided_slice %58 {offsets = [1, 0], sizes = [1, 16], strides = [1, 1]} : vector<4x16xf32> to vector<1x16xf32>
    %67 = vector.broadcast %65 : vector<4x1xf32> to vector<4x16xf32>
    %68 = vector.broadcast %66 : vector<1x16xf32> to vector<4x16xf32>
    %69 = arith.mulf %67, %68 : vector<4x16xf32>
    %70 = arith.addf %64, %69 : vector<4x16xf32>
    %71 = vector.extract_strided_slice %0 {offsets = [0, 10], sizes = [4, 1], strides = [1, 1]} : vector<4x12xf32> to vector<4x1xf32>
    %72 = vector.extract_strided_slice %58 {offsets = [2, 0], sizes = [1, 16], strides = [1, 1]} : vector<4x16xf32> to vector<1x16xf32>
    %73 = vector.broadcast %71 : vector<4x1xf32> to vector<4x16xf32>
    %74 = vector.broadcast %72 : vector<1x16xf32> to vector<4x16xf32>
    %75 = arith.mulf %73, %74 : vector<4x16xf32>
    %76 = arith.addf %70, %75 : vector<4x16xf32>
    %77 = vector.extract_strided_slice %0 {offsets = [0, 11], sizes = [4, 1], strides = [1, 1]} : vector<4x12xf32> to vector<4x1xf32>
    %78 = vector.extract_strided_slice %58 {offsets = [3, 0], sizes = [1, 16], strides = [1, 1]} : vector<4x16xf32> to vector<1x16xf32>
    %79 = vector.broadcast %77 : vector<4x1xf32> to vector<4x16xf32>
    %80 = vector.broadcast %78 : vector<1x16xf32> to vector<4x16xf32>
    %81 = arith.mulf %79, %80 : vector<4x16xf32>
    %82 = arith.addf %76, %81 : vector<4x16xf32>
    %83 = vector.broadcast %1 : vector<4x1xf32> to vector<4x16xf32>
    %84 = arith.addf %82, %83 : vector<4x16xf32>
    %cst_12 = arith.constant 0.000000e+00 : f32
    %85 = vector.broadcast %cst_12 : f32 to vector<4x16xf32>
    %86 = arith.maximumf %84, %85 : vector<4x16xf32>
    %c0_13 = arith.constant 0 : index
    %c0_14 = arith.constant 0 : index
    %c0_15 = arith.constant 0 : index
    %87 = vector.load %arg1[%c0_13, %c0_14, %c0_15] : memref<1x4x16xf32, #tpu.memory_space<vmem>>, vector<1x4x16xf32>
    %88 = vector.shape_cast %87 : vector<1x4x16xf32> to vector<4x16xf32>
    %89 = arith.addf %86, %88 : vector<4x16xf32>
    %c0_16 = arith.constant 0 : index
    %c0_17 = arith.constant 0 : index
    %c0_18 = arith.constant 0 : index
    %90 = vector.load %arg4[%c0_16, %c0_17, %c0_18] : memref<1x4x16xf32, #tpu.memory_space<vmem>>, vector<1x4x16xf32>
    %91 = vector.shape_cast %90 : vector<1x4x16xf32> to vector<4x16xf32>
    %92 = vector.shape_cast %89 : vector<4x16xf32> to vector<1x4x16xf32>
    tpu.vector_store %arg4[%c0_16, %c0_17, %c0_18], %92 {strides = array<i32>} : memref<1x4x16xf32, #tpu.memory_space<vmem>>, vector<1x4x16xf32>,
    return
  }
  func.func @transform_0(%arg0: i32) -> (i32, i32, i32) {
    %c0_i32 = arith.constant 0 : i32
    %c0_i32_0 = arith.constant 0 : i32
    %c0_i32_1 = arith.constant 0 : i32
    return %arg0, %c0_i32, %c0_i32_0 : i32, i32, i32
  }
  func.func @transform_1(%arg0: i32) -> (i32, i32) {
    %c0_i32 = arith.constant 0 : i32
    %c0_i32_0 = arith.constant 0 : i32
    %c0_i32_1 = arith.constant 0 : i32
    return %c0_i32, %c0_i32_0 : i32, i32
  }
  func.func @transform_2(%arg0: i32) -> (i32, i32) {
    %c0_i32 = arith.constant 0 : i32
    %c0_i32_0 = arith.constant 0 : i32
    %c0_i32_1 = arith.constant 0 : i32
    return %c0_i32, %c0_i32_0 : i32, i32
  }
  func.func @transform_3(%arg0: i32) -> (i32, i32, i32) {
    %c0_i32 = arith.constant 0 : i32
    %c0_i32_0 = arith.constant 0 : i32
    %c0_i32_1 = arith.constant 0 : i32
    return %arg0, %c0_i32, %c0_i32_0 : i32, i32, i32
  }
}

</mosaic_0001>

<bundles_post_ra>
// kernel: tpu_custom_call.1
= control target key start
LH: loop header
LB: loop body
LE: loop exit
PB: predicated region body
PF: predicated region fallthrough
CT: control target
= control target key end

     0   :  { %8 = vsyncpa [#allocation3], 0  ;;  %s789_s0 = inlined_call_operand.hbm [shape: f32[2,4,16], index: 0, kind: input, shape index: {}]   ;;  %s790_s1 = inlined_call_operand.vmem [shape: f32[4,12], index: 1, kind: input, shape index: {}]   ;;  %s791_s2 = inlined_call_operand.vmem [shape: f32[4,1], index: 2, kind: input, shape index: {}]   ;;  %s792_s3 = inlined_call_operand.hbm [shape: f32[2,4,16], index: 3, kind: output, shape index: {}]  }
   0x1   :  { %10 = vsyncpa [#allocation3 + $0x1], 0 }
   0x2   :  { %11 = vsyncpa [#allocation4], 0 }
   0x3   :  { %13 = vsyncpa [#allocation4 + $0x1], 0  ;;  %s629_s12 = smov 0   ;;  %s631_s13 = smov 0  }
   0x4   :  { %s633_s14 = smov 0   ;;  %s635_s15 = smov 0  }
   0x5 LB: > { %s650_s16 = sadd.s32 4294967295, %s591_s15   ;;  %s414_s17 = sadd.s32 4294967294, %s591_s15   ;;  %s591_s15 = sphi %s635_s15, %s809_s15   ;;  %s587_s14 = sphi %s633_s14, %s808_s14   ;;  %s583_s13 = sphi %s631_s13, %s807_s13   ;;  %s579_s12 = sphi %s629_s12, %s806_s12  }
   0x6   : > { %s654_s18 = sadd.s32 1, %s591_s15   ;;  %s26_s19 = sadd.s32 1, %s587_s14 }
   0x7   : > { %s23_s20 = ssub.s32 %s591_s15, %s654_s18  ;;  %p33_p0 = scmp.ne.s32.totalorder %s587_s14, %s583_s13 }
   0x8   : > { %p24_p1 = scmp.eq.s32.totalorder %s23_s20, 0  ;;  %p34_p2 = scmp.eq.s32.totalorder %s591_s15, 0 }
   0x9   : > { %p39_p3 = scmp.ne.s32.totalorder %s583_s13, %s579_s12  ;;  %p40_p4 = scmp.eq.s32.totalorder %s650_s16, 0 }
   0xa   : > { %s666_s21 = scalar_select %p24_p1, %s587_s14, %s26_s19  }
   0xb   : > { %p668_p5 = por %p34_p2, %p33_p0  ;;  %p672_p6 = por %p40_p4, %p39_p3 }
   0xc   : > { %p105_p7 = scmp.eq.s32.totalorder %s650_s16, 1  ;;  %p111_p8 = scmp.eq.s32.totalorder %s414_s17, 1 }
   0xd   : > { %s796_s23 = scalar_select %p672_p6, 1, 0 }
   0xe   : > { %p438_p10 = scmp.lt.s32.totalorder %s591_s15, 2  ;;  %p679_p11 = por %p105_p7, %p33_p0 }
   0xf   : > { %p683_p12 = por %p111_p8, %p39_p3  ;;  %s137_s26 = sand.u32 1, %s587_s14  }
  0x10   : > { %s797_s24 = scalar_select %p679_p11, 1, 0 }
  0x11   : > { %s798_s25 = scalar_select %p683_p12, 1, 0 }
  0x12   : > { %s418_s27 = sshll.u32 %s591_s15, 6  ;;  %s417_s28 = sshll.u32 %s137_s26, 2 }
  0x13   : > { %s692_s4 = scalar_lea.hbm %s789_s0, %s418_s27  ;;  %s141_s5 = scalar_lea.vmem [#allocation2], %s417_s28 }
  0x14   : > { %s148_s6 = sshll.u32 %s141_s5, 4  ;;  %p696_p13 = pnand %p438_p10, %p668_p5  ;;  %s700_s6 = int_to_ptr.vmem [resolvable:$true] %s148_s6 }
  0x15   : > { %s138_s8 = scalar_lea.sflag [#allocation3], %s137_s26  ;;  %s499_s9 = scalar_lea.hbm %s692_s4, 64 }
  0x16   : > { %p500_p2 = scmp.ne.s32.totalorder %s692_s4, %s499_s9  ;;  %p501_p3 = pneg %p696_p13 }
  0x17   : > { %s504_s17 = scalar_lea.hbm %s789_s0, 128  ;;  %p505_p5 = scmp.lt.s32.totalorder %s692_s4, %s789_s0 }
  0x18   : > { %p502_p4 = pnand %p501_p3, %p500_p2  ;;  %p506_p8 = scmp.lt.s32.totalorder %s504_s17, %s499_s9 }
  0x1a   : > { %p503_p7 = pneg %p502_p4  ;;  %p507_p10 = por %p506_p8, %p505_p5 }
  0x1c   : > { %p508_p9 = pnand %p507_p10, %p503_p7 }
  0x1e   : > { %511 = shalt.err (!%p508_p9)
}
  0x1f   : > { %s512_s22 = scalar_lea.vmem %s700_s6, 64  ;;  %s593_s26 = smov [#allocation2]  }
  0x20   : > { %p513_p0 = scmp.ne.s32.totalorder %s700_s6, %s512_s22  ;;  %s517_s27 = sshll.u32 %s593_s26, 4  ;;  %s518_s27 = int_to_ptr.vmem [resolvable:$false] %s517_s27 }
  0x21   : > { %s519_s28 = scalar_lea.vmem %s518_s27, 128  ;;  %p520_p4 = scmp.lt.s32.totalorder %s700_s6, %s518_s27 }
  0x22   : > { %p515_p1 = pnand %p513_p0, %p501_p3  ;;  %p521_p12 = scmp.lt.s32.totalorder %s519_s28, %s512_s22 }
  0x24   : > { %p516_p2 = pneg %p515_p1  ;;  %p522_p11 = por %p521_p12, %p520_p4 }
  0x26   : > { %p523_p6 = pnand %p522_p11, %p516_p2 }
  0x28   : > { %526 = shalt.err (!%p523_p6)
}
  0x29   : > { %433 = dma.hbm_to_vmem [thread:$0]  (!%p696_p13), %s692_s4, 64, %s700_s6, %s138_s8  }
  0x2a   : > { %p800_p9 = scmp.lt.s32.totalorder %s591_s15, 3  ;;  %p801_p7 = scmp.ge.s32.totalorder %s591_s15, 1 }
  0x2c   : > { %p154_p0 = pnand %p801_p7, %p800_p9 }
  0x2d   : > { %s727_s29 = sand.u32 (!%p154_p0), 1, %s583_s13   ;;  %p802_p6 = scmp.ne.s32.totalorder (!%p154_p0), %s796_s23, 0 }
  0x2e   : > { %157 = sbr.rel (%p154_p0) target bundleno = 238 (0xee), region = 32  ;;  %s420_s30 = sshll.u32 (!%p154_p0), %s727_s29, 2 }
  0x2f   : > { %s160_s5 = scalar_lea.sflag (!%p154_p0), [#allocation3], %s727_s29  ;;  %s163_s7 = scalar_lea.vmem (!%p154_p0), [#allocation2], %s420_s30 }
  0x33   : > { %570 = dma.done.wait (%p802_p6), %s160_s5, 64  }
  0x34   : > { %572 = vsyncadd (%p802_p6), %s160_s5, 4294967232  ;;  %v594_v0 = vmov 0   ;;  %v595_v1 = vmov 2   ;;  %v737_v2 = vld [vmem:[%s163_s7] sm:$0xf]  ;;  %s596_s8 = smov 1   ;;  %v200_v15 = vlaneseq }
  0x35   : > { %486 = vset.pattern.permute.xlu0 %v594_v0  ;;  %488 = vset.pattern.permute.xlu1 %v595_v1  ;;  %v186_v3 = vld [vmem:[%s790_s1] sm:$0xf]  ;;  %v597_v4 = vmov 1   ;;  %v598_v5 = vmov 3   ;;  %v599_v6 = vmov 4   ;;  %v600_v7 = vmov 5  }
  0x36   : > { %190 = vrot.lane.b32.xlu1 %v737_v2, %s596_s8  ;;  %197 = vperm.xlu0 %486, %v186_v3   ;;  %v601_v8 = vmov 7   ;;  %v602_v9 = vmov 6   ;;  %v603_v10 = vmov 9   ;;  %v187_v11 = vld [vmem:[%s791_s2] sm:$0xf]  ;;  %v604_v12 = vmov 8  }
  0x37   : > { %s605_s10 = smov 127   ;;  %v606_v13 = vmov 10   ;;  %v607_v14 = vmov 11   ;;  %v201_v16 = vshrl.u32 %v200_v15, 7  ;;  %vm193_vm0 = vcmask 7168   ;;  %s423_s11 = sshll.u32 %s650_s16, 6 }
  0x38   : > { %vm278_vm1 = vcmask 121856   ;;  %s185_s17 = scalar_lea.vmem [#allocation5], %s420_s30  ;;  %vm328_vm2 = vcmask 125952   ;;  %s342_s26 = scalar_lea.hbm %s792_s3, %s423_s11 }
  0x39   : > { %v211_v19 = vsub.s32 1, %v201_v16  ;;  %v202_v21 = vsub.s32 0, %v201_v16  ;;  %v221_v26 = vsub.s32 2, %v201_v16  ;;  %v231_v29 = vsub.s32 3, %v201_v16  ;;  %s344_s19 = sshll.u32 %s185_s17, 4  ;;  %s331_s27 = scalar_lea.sflag [#allocation4], %s727_s29  ;;  %s345_s19 = int_to_ptr.vmem [resolvable:$true] %s344_s19 }
  0x3a   : > { %216 = vperm.xlu1 %488, %v186_v3   ;;  %487 = vset.pattern.permute.xlu0 %v597_v4  ;;  %s527_s28 = scalar_lea.vmem %s345_s19, 64  ;;  %p803_p12 = scmp.ne.s32.totalorder %s797_s24, 0 }
  0x3b   : > { %206 = vperm.xlu0 %487, %v186_v3   ;;  %v242_v37 = vrot.slane %v737_v2, %v202_v21  ;;  %v252_v42 = vrot.slane %v737_v2, %v211_v19  ;;  %v262_v44 = vrot.slane %v737_v2, %v221_v26  ;;  %v272_v48 = vrot.slane %v737_v2, %v231_v29  ;;  %p528_p11 = scmp.ne.s32.totalorder %s345_s19, %s527_s28  ;;  %s608_s16 = smov [#allocation5]  }
  0x3c   : > { %s531_s5 = sshll.u32 %s608_s16, 4  ;;  %s532_s5 = int_to_ptr.vmem [resolvable:$false] %s531_s5 }
  0x3d   : > { %p529_p13 = pnand %p528_p11, %p803_p12  ;;  %s533_s30 = scalar_lea.vmem %s532_s5, 128 }
  0x3e   : > { %489 = vset.pattern.permute.xlu1 %v598_v5  ;;  %p534_p3 = scmp.lt.s32.totalorder %s345_s19, %s532_s5  ;;  %p535_p5 = scmp.lt.s32.totalorder %s533_s30, %s527_s28 }
  0x3f   : > { %226 = vperm.xlu1 %489, %v186_v3   ;;  %490 = vset.pattern.permute.xlu0 %v599_v6  ;;  %p530_p1 = pneg %p529_p13 }
  0x40   : > { %236 = vperm.xlu0 %490, %v186_v3   ;;  %p536_p8 = por %p535_p5, %p534_p3 }
  0x42   : > { %p537_p10 = pnand %p536_p8, %p530_p1 }
  0x43   : > { %491 = vset.pattern.permute.xlu1 %v600_v7 }
  0x44   : > { %246 = vperm.xlu1 %491, %v186_v3   ;;  %493 = vset.pattern.permute.xlu0 %v601_v8 }
  0x45   : > { %266 = vperm.xlu0 %493, %v186_v3  }
  0x48   : > { %492 = vset.pattern.permute.xlu1 %v602_v9 }
  0x49   : > { %256 = vperm.xlu1 %492, %v186_v3   ;;  %495 = vset.pattern.permute.xlu0 %v603_v10 }
  0x4a   : > { %291 = vperm.xlu0 %495, %v186_v3  }
  0x4d   : > { %494 = vset.pattern.permute.xlu1 %v604_v12 }
  0x4e   : > { %281 = vperm.xlu1 %494, %v186_v3   ;;  %498 = vset.pattern.permute.xlu0 %v594_v0 }
  0x4f   : > { %322 = vperm.xlu0 %498, %v187_v11  }
  0x52   : > { %275 = vrot.lane.b32.xlu1 %v737_v2, %s605_s10 }
  0x53   : > { %496 = vset.pattern.permute.xlu1 %v606_v13 }
  0x56   : > { %301 = vperm.xlu1 %496, %v186_v3  }
  0x5a   : > { %497 = vset.pattern.permute.xlu1 %v607_v14 }
  0x5b   : > { %311 = vperm.xlu1 %497, %v186_v3  }
  0xa8   : > { %v191_v17 = vpop.permute.xlu1 %190 }
  0xa9   : > { %v194_v20 = vsel %vm193_vm0, 0.0, %v191_v17 }
  0xaa   : > { %v212_v23 = vrot.slane %v194_v20, %v211_v19  ;;  %v203_v25 = vrot.slane %v194_v20, %v202_v21  ;;  %v222_v31 = vrot.slane %v194_v20, %v221_v26  ;;  %v232_v34 = vrot.slane %v194_v20, %v231_v29 }
  0xb1   : > { %v198_v18 = vpop.permute.xlu0 %197 }
  0xb2   : > { %v204_v28 = vmul.f32 %v203_v25, %v198_v18 }
  0xb5   : > { %v217_v22 = vpop.permute.xlu1 %216 }
  0xb6   : > { %v207_v24 = vpop.permute.xlu0 %206  ;;  %v223_v33 = vmul.f32 %v222_v31, %v217_v22 }
  0xb7   : > { %v213_v27 = vmul.f32 %v212_v23, %v207_v24 }
  0xb9   : > { %v214_v32 = vadd.f32 %v213_v27, %v204_v28 }
  0xba   : > { %v227_v30 = vpop.permute.xlu1 %226 }
  0xbb   : > { %v224_v35 = vadd.f32 %v223_v33, %v214_v32  ;;  %v233_v36 = vmul.f32 %v232_v34, %v227_v30  ;;  %v237_v39 = vpop.permute.xlu0 %236 }
  0xbc   : > { %v243_v41 = vmul.f32 %v242_v37, %v237_v39 }
  0xbd   : > { %v234_v40 = vadd.f32 %v233_v36, %v224_v35 }
  0xbf   : > { %v247_v38 = vpop.permute.xlu1 %246  ;;  %v244_v45 = vadd.f32 %v243_v41, %v234_v40 }
  0xc0   : > { %v253_v46 = vmul.f32 %v252_v42, %v247_v38  ;;  %v267_v50 = vpop.permute.xlu0 %266 }
  0xc1   : > { %v273_v53 = vmul.f32 %v272_v48, %v267_v50 }
  0xc2   : > { %v254_v51 = vadd.f32 %v253_v46, %v244_v45 }
  0xc4   : > { %v257_v43 = vpop.permute.xlu1 %256 }
  0xc5   : > { %v263_v47 = vmul.f32 %v262_v44, %v257_v43  ;;  %v292_v58 = vpop.permute.xlu0 %291 }
  0xc7   : > { %v264_v52 = vadd.f32 %v263_v47, %v254_v51 }
  0xc9   : > { %v282_v49 = vpop.permute.xlu1 %281  ;;  %v274_v59 = vadd.f32 %v273_v53, %v264_v52 }
  0xca   : > { %v323_v8 = vpop.permute.xlu0 %322 }
  0xcd   : > { %v276_v54 = vpop.permute.xlu1 %275 }
  0xce   : > { %v279_v55 = vsel %vm278_vm1, %v276_v54, 0.0 }
  0xcf   : > { %v287_v56 = vrot.slane %v279_v55, %v202_v21  ;;  %v297_v57 = vrot.slane %v279_v55, %v211_v19  ;;  %v307_v61 = vrot.slane %v279_v55, %v221_v26  ;;  %v317_v4 = vrot.slane %v279_v55, %v231_v29 }
  0xd1   : > { %v288_v60 = vmul.f32 %v287_v56, %v282_v49  ;;  %v302_v62 = vpop.permute.xlu1 %301  ;;  %v298_v0 = vmul.f32 %v297_v57, %v292_v58 }
  0xd2   : > { %v308_v3 = vmul.f32 %v307_v61, %v302_v62 }
  0xd3   : > { %v289_v63 = vadd.f32 %v288_v60, %v274_v59 }
  0xd5   : > { %v299_v1 = vadd.f32 %v298_v0, %v289_v63 }
  0xd6   : > { %v312_v5 = vpop.permute.xlu1 %311 }
  0xd7   : > { %v309_v6 = vadd.f32 %v308_v3, %v299_v1  ;;  %v318_v7 = vmul.f32 %v317_v4, %v312_v5 }
  0xd9   : > { %v319_v9 = vadd.f32 %v318_v7, %v309_v6 }
  0xdb   : > { %v325_v10 = vadd.f32 %v323_v8, %v319_v9 }
  0xdd   : > { %v326_v11 = vmax.f32 %v325_v10, 0.0 }
  0xdf   : > { %v327_v12 = vadd.f32 %v326_v11, %v737_v2 }
  0xe1   : > { %329 = vst.msk [vmem:[%s185_s17] sm:$0xf] %vm328_vm2, %v327_v12 }
  0xe2   : > { %540 = shalt.err (!%p537_p10)
}
  0xe3   : > { %s541_s7 = scalar_lea.hbm %s342_s26, 64  ;;  %s545_s6 = scalar_lea.hbm %s792_s3, 128 }
  0xe4   : > { %p542_p2 = scmp.ne.s32.totalorder %s342_s26, %s541_s7  ;;  %p546_p7 = scmp.lt.s32.totalorder %s342_s26, %s792_s3 }
  0xe5   : > { %p547_p0 = scmp.lt.s32.totalorder %s545_s6, %s541_s7 }
  0xe6   : > { %p543_p4 = pnand %p542_p2, %p803_p12 }
  0xe7   : > { %p548_p6 = por %p547_p0, %p546_p7 }
  0xe8   : > { %p544_p9 = pneg %p543_p4 }
  0xea   : > { %p549_p11 = pnand %p548_p6, %p544_p9 }
  0xec   : > { %552 = shalt.err (!%p549_p11)
}
  0xed   : > { %428 = dma.vmem_to_hbm [thread:$0]  (%p803_p12), %s345_s19, 64, %s342_s26, %s331_s27  }
  0xee PF: > { %s356_s9 = sand.u32 1, %s579_s12   ;;  %p804_p13 = scmp.ne.s32.totalorder %s798_s25, 0 }
  0xef   : > { %p805_p1 = scmp.ge.s32.totalorder %s591_s15, 2  ;;  %s357_s10 = scalar_lea.sflag [#allocation4], %s356_s9 }
  0xf1   : > { %p435_p3 = pnand %p805_p1, %p804_p13 }
  0xf3   : > { %p436_p5 = pneg %p435_p3 }
  0xf5   : > { %574 = dma.done.wait (%p436_p5), %s357_s10, 64  }
  0xf6   : > { %576 = vsyncadd (%p436_p5), %s357_s10, 4294967232  ;;  %p16_p8 = scmp.ge.s32.totalorder %s654_s18, 4   ;;  %s806_s12 = smov %s583_s13 }
  0xf7   : > { %s807_s13 = smov %s587_s14  ;;  %s808_s14 = smov %s666_s21 }
  0xf8   : > { %s809_s15 = smov %s654_s18  ;;  %18 = sbr.rel (!%p16_p8) target bundleno = 5 (0x5), region = 77 }
  0xfd   :  { %362 = vsyncpa [#allocation3], 1 }
  0xfe   :  { %364 = vsyncpa [#allocation3 + $0x1], 1 }
  0xff   :  { %365 = vsyncpa [#allocation4], 1 }
 0x100   :  { %367 = vsyncpa [#allocation4 + $0x1], 1 }

</bundles_post_ra>
